<compile_context>
chip_gen: v5e
topology: v5e:2x2
jax: 0.10.0
libtpu: 0.0.40
codegen_flags: <defaults>
</compile_context>

<pallas_src>
import functools

import jax
import jax.numpy as jnp
from jax import lax
from jax.experimental import pallas as pl
from jax.experimental.pallas import tpu as pltpu


def _round_up(x, m):
    return ((x + m - 1) // m) * m


def _cdiv(a, b):
    return -(-a // b)


def _dice_partial_kernel(pred_ref, target_ref, inter_out_ref, sum_out_ref, *,
                         m_rows, tm, steps, steps_per_chunk, need_mask):
    """Grid = (chunk [parallel], step [arbitrary]).

    pred_ref/target_ref: (B, tm, 128) VMEM tiles of the (B, M, 128) inputs
    inter_out_ref:       (1, B, 128) per-chunk lane-wide partial sum of p*t
    sum_out_ref:         (1, B, 128) per-chunk lane-wide partial sum of p+t
    """
    c = pl.program_id(0)
    k = pl.program_id(1)
    g = c * steps_per_chunk + k            # global (logical) step index

    @pl.when(k == 0)
    def _():
        inter_out_ref[...] = jnp.zeros_like(inter_out_ref)
        sum_out_ref[...] = jnp.zeros_like(sum_out_ref)

    p = pred_ref[...].astype(jnp.float32)      # (B, tm, 128)
    t = target_ref[...].astype(jnp.float32)

    def accumulate(pv, tv):
        # Sublane-axis partial reductions only (VPU); lane axis stays intact.
        inter_out_ref[...] += jnp.sum(pv * tv, axis=1)[None]   # (1, B, 128)
        sum_out_ref[...] += jnp.sum(pv + tv, axis=1)[None]     # (1, B, 128)

    if need_mask:
        # Only edge tiles (partial last block of M, or surplus steps of the
        # short parallel chunk) pay for the iota + compare + selects.
        last_full = m_rows // tm

        @pl.when(g < last_full)
        def _():
            accumulate(p, t)

        @pl.when(g >= last_full)
        def _():
            rows = lax.broadcasted_iota(jnp.int32, p.shape, 1) + g * tm
            valid = rows < m_rows
            accumulate(jnp.where(valid, p, 0.0), jnp.where(valid, t, 0.0))
    else:
        accumulate(p, t)


def dice_loss(pred, target, *, block_rows=None):
    """Pallas implementation of DiceLoss.forward (smooth=1)."""
    if isinstance(pred, tuple):
        pred = pred[0]
    smooth = 1.0
    B = target.shape[0]
    p = pred.reshape(B, -1)
    t = target.reshape(B, -1)
    N = p.shape[1]

    # Lane axis must be 128 wide.  Common case (N % 128 == 0) needs no pad.
    # TODO(synk): handle N % 128 != 0 with an in-kernel lane mask instead of
    # jnp.pad to avoid the extra HBM pass on that rare path.
    if N % 128 != 0:
        pad_cols = 128 - (N % 128)
        p = jnp.pad(p, ((0, 0), (0, pad_cols)))
        t = jnp.pad(t, ((0, 0), (0, pad_cols)))
    M = p.shape[1] // 128
    p = p.reshape(B, M, 128)
    t = t.reshape(B, M, 128)

    itemsize = max(jnp.dtype(p.dtype).itemsize, jnp.dtype(t.dtype).itemsize)

    # Generation-aware tile sizing: ~4 MiB/input/step on 128 MiB-VMEM chips
    # (v5e/v6e), ~2 MiB on 64 MiB-VMEM chips (v7x per-TC).
    try:
        vmem_cap = int(pltpu.get_tpu_info().vmem_capacity_bytes)
    except Exception:
        vmem_cap = 64 << 20
    tile_target = (4 << 20) if vmem_cap >= (128 << 20) else (2 << 20)

    if block_rows is None:
        tm = tile_target // (B * 128 * itemsize)
        tm = max(8, (tm // 8) * 8)
    else:
        tm = max(8, (block_rows // 8) * 8)
    tm = min(tm, _round_up(M, 8))

    steps = _cdiv(M, tm)
    # Always split into 2 chunks when there is more than one step so the
    # leading "parallel" axis can be sharded across TensorCores (v7x); the
    # short chunk's surplus step is masked away inside the kernel.
    n_par = 2 if steps >= 2 else 1
    steps_per_chunk = _cdiv(steps, n_par)
    total_steps = n_par * steps_per_chunk
    need_mask = (M % tm != 0) or (total_steps > steps)

    # Allow the double-buffered footprint (2 inputs x 2 buffers x tile).
    tile_bytes = B * tm * 128 * itemsize
    vmem_limit = int(min(vmem_cap, max(32 << 20, 4 * tile_bytes + (2 << 20))))

    kernel = functools.partial(
        _dice_partial_kernel,
        m_rows=M, tm=tm, steps=steps, steps_per_chunk=steps_per_chunk,
        need_mask=need_mask)

    # Clamp the block index so the short chunk's surplus step re-reads the
    # last valid block (its contribution is fully masked off in the kernel).
    in_map = lambda c, k: (0, jnp.minimum(c * steps_per_chunk + k, steps - 1), 0)
    out_map = lambda c, k: (c, 0, 0)

    inter_part, sum_part = pl.pallas_call(
        kernel,
        out_shape=(
            jax.ShapeDtypeStruct((n_par, B, 128), jnp.float32),
            jax.ShapeDtypeStruct((n_par, B, 128), jnp.float32),
        ),
        grid_spec=pltpu.PrefetchScalarGridSpec(
            num_scalar_prefetch=0,
            grid=(n_par, steps_per_chunk),
            in_specs=[
                pl.BlockSpec((B, tm, 128), in_map),
                pl.BlockSpec((B, tm, 128), in_map),
            ],
            out_specs=[
                pl.BlockSpec((1, B, 128), out_map),
                pl.BlockSpec((1, B, 128), out_map),
            ],
        ),
        compiler_params=pltpu.CompilerParams(
            dimension_semantics=("parallel", "arbitrary"),
            vmem_limit_bytes=vmem_limit,
        ),
    )(p, t)

    # Tiny final combine (cross-chunk + cross-lane) in plain JAX.
    inter = jnp.sum(inter_part, axis=(0, 2))   # (B,)
    total = jnp.sum(sum_part, axis=(0, 2))     # (B,)
    dice = (2.0 * inter + smooth) / (total + smooth)
    return 1.0 - jnp.sum(dice) / B


def dice_loss_ref(pred, target):
    """Pure-JAX reference mirroring the PyTorch module."""
    if isinstance(pred, tuple):
        pred = pred[0]
    smooth = 1.0
    B = target.shape[0]
    p = pred.reshape(B, -1).astype(jnp.float32)
    t = target.reshape(B, -1).astype(jnp.float32)
    inter = jnp.sum(p * t, axis=1)
    dice = (2.0 * inter + smooth) / (jnp.sum(p, axis=1) + jnp.sum(t, axis=1) + smooth)
    return 1.0 - jnp.sum(dice) / B


if __name__ == "__main__":
    key = jax.random.PRNGKey(0)
    k1, k2, k3, k4 = jax.random.split(key, 4)

    # Main case: N % 128 == 0, single step (no pad, no mask).
    B, C, H, W = 2, 4, 16, 16
    pred = jax.nn.sigmoid(jax.random.normal(k1, (B, C, H, W), dtype=jnp.float32))
    target = (jax.random.uniform(k2, (B, C, H, W)) > 0.5).astype(jnp.float32)

    loss = jax.block_until_ready(dice_loss(pred, target))
    ref = jax.block_until_ready(dice_loss_ref(pred, target))
    assert jnp.allclose(loss, ref, rtol=1e-5, atol=1e-6), (loss, ref)

    # Edge case: lane remainder + partial/surplus steps + 2-chunk split.
    B2, C2, H2, W2 = 2, 3, 40, 40          # N = 4800 (not a multiple of 128)
    pred2 = jax.nn.sigmoid(jax.random.normal(k3, (B2, C2, H2, W2), dtype=jnp.float32))
    target2 = (jax.random.uniform(k4, (B2, C2, H2, W2)) > 0.5).astype(jnp.float32)

    loss2 = jax.block_until_ready(dice_loss(pred2, target2, block_rows=8))
    ref2 = jax.block_until_ready(dice_loss_ref(pred2, target2))
    assert jnp.allclose(loss2, ref2, rtol=1e-5, atol=1e-6), (loss2, ref2)

    print("KERNEL_OK")
</pallas_src>

<mosaic_0001>
module attributes {stable_mosaic.version = 11 : i64} {
  func.func @_dice_partial_kernel(%arg0: i32, %arg1: i32, %arg2: memref<2x8x128xf32, #tpu.memory_space<vmem>>, %arg3: memref<2x8x128xf32, #tpu.memory_space<vmem>>, %arg4: memref<1x2x128xf32, #tpu.memory_space<vmem>>, %arg5: memref<1x2x128xf32, #tpu.memory_space<vmem>>) attributes {dimension_semantics = [#tpu.dimension_semantics<parallel>, #tpu.dimension_semantics<arbitrary>], iteration_bounds = array<i64: 1, 1>, scalar_prefetch = 0 : i64, scratch_operands = 0 : i64, tpu.core_type = #tpu.core_type<tc>, window_params = [{transform_indices = @transform_0, window_bounds = array<i64: 2, 8, 128>}, {transform_indices = @transform_1, window_bounds = array<i64: 2, 8, 128>}, {transform_indices = @transform_2, window_bounds = array<i64: 1, 2, 128>}, {transform_indices = @transform_3, window_bounds = array<i64: 1, 2, 128>}]} {
    %c0_i32 = arith.constant 0 : i32
    %0 = arith.cmpi eq, %arg1, %c0_i32 : i32
    %1 = arith.extui %0 : i1 to i32
    %c0_i32_0 = arith.constant 0 : i32
    %2 = arith.cmpi ne, %1, %c0_i32_0 : i32
    scf.if %2 {
      %cst_19 = arith.constant 0.000000e+00 : f32
      %17 = vector.broadcast %cst_19 : f32 to vector<1x2x128xf32>
      %c0_20 = arith.constant 0 : index
      %c0_21 = arith.constant 0 : index
      %c0_22 = arith.constant 0 : index
      %18 = vector.load %arg4[%c0_20, %c0_21, %c0_22] : memref<1x2x128xf32, #tpu.memory_space<vmem>>, vector<1x2x128xf32>
      tpu.vector_store %arg4[%c0_20, %c0_21, %c0_22], %17 {strides = array<i32>} : memref<1x2x128xf32, #tpu.memory_space<vmem>>, vector<1x2x128xf32>,
      %cst_23 = arith.constant 0.000000e+00 : f32
      %19 = vector.broadcast %cst_23 : f32 to vector<1x2x128xf32>
      %c0_24 = arith.constant 0 : index
      %c0_25 = arith.constant 0 : index
      %c0_26 = arith.constant 0 : index
      %20 = vector.load %arg5[%c0_24, %c0_25, %c0_26] : memref<1x2x128xf32, #tpu.memory_space<vmem>>, vector<1x2x128xf32>
      tpu.vector_store %arg5[%c0_24, %c0_25, %c0_26], %19 {strides = array<i32>} : memref<1x2x128xf32, #tpu.memory_space<vmem>>, vector<1x2x128xf32>,
    } else {
    }
    %c0 = arith.constant 0 : index
    %c0_1 = arith.constant 0 : index
    %c0_2 = arith.constant 0 : index
    %3 = vector.load %arg2[%c0, %c0_1, %c0_2] : memref<2x8x128xf32, #tpu.memory_space<vmem>>, vector<2x8x128xf32>
    %c0_3 = arith.constant 0 : index
    %c0_4 = arith.constant 0 : index
    %c0_5 = arith.constant 0 : index
    %4 = vector.load %arg3[%c0_3, %c0_4, %c0_5] : memref<2x8x128xf32, #tpu.memory_space<vmem>>, vector<2x8x128xf32>
    %c0_6 = arith.constant 0 : index
    %c0_7 = arith.constant 0 : index
    %c0_8 = arith.constant 0 : index
    %5 = vector.load %arg4[%c0_6, %c0_7, %c0_8] : memref<1x2x128xf32, #tpu.memory_space<vmem>>, vector<1x2x128xf32>
    %6 = arith.mulf %3, %4 : vector<2x8x128xf32>
    %cst = arith.constant dense<0.000000e+00> : vector<2x128xf32>
    %7 = vector.multi_reduction <add>, %6, %cst [1] : vector<2x8x128xf32> to vector<2x128xf32>
    %8 = vector.shape_cast %7 : vector<2x128xf32> to vector<1x2x128xf32>
    %9 = arith.addf %5, %8 : vector<1x2x128xf32>
    %c0_9 = arith.constant 0 : index
    %c0_10 = arith.constant 0 : index
    %c0_11 = arith.constant 0 : index
    %10 = vector.load %arg4[%c0_9, %c0_10, %c0_11] : memref<1x2x128xf32, #tpu.memory_space<vmem>>, vector<1x2x128xf32>
    tpu.vector_store %arg4[%c0_9, %c0_10, %c0_11], %9 {strides = array<i32>} : memref<1x2x128xf32, #tpu.memory_space<vmem>>, vector<1x2x128xf32>,
    %c0_12 = arith.constant 0 : index
    %c0_13 = arith.constant 0 : index
    %c0_14 = arith.constant 0 : index
    %11 = vector.load %arg5[%c0_12, %c0_13, %c0_14] : memref<1x2x128xf32, #tpu.memory_space<vmem>>, vector<1x2x128xf32>
    %12 = arith.addf %3, %4 : vector<2x8x128xf32>
    %cst_15 = arith.constant dense<0.000000e+00> : vector<2x128xf32>
    %13 = vector.multi_reduction <add>, %12, %cst_15 [1] : vector<2x8x128xf32> to vector<2x128xf32>
    %14 = vector.shape_cast %13 : vector<2x128xf32> to vector<1x2x128xf32>
    %15 = arith.addf %11, %14 : vector<1x2x128xf32>
    %c0_16 = arith.constant 0 : index
    %c0_17 = arith.constant 0 : index
    %c0_18 = arith.constant 0 : index
    %16 = vector.load %arg5[%c0_16, %c0_17, %c0_18] : memref<1x2x128xf32, #tpu.memory_space<vmem>>, vector<1x2x128xf32>
    tpu.vector_store %arg5[%c0_16, %c0_17, %c0_18], %15 {strides = array<i32>} : memref<1x2x128xf32, #tpu.memory_space<vmem>>, vector<1x2x128xf32>,
    return
  }
  func.func @transform_0(%arg0: i32, %arg1: i32) -> (i32, i32, i32) {
    %c1_i32 = arith.constant 1 : i32
    %0 = arith.muli %arg0, %c1_i32 : i32
    %1 = arith.addi %0, %arg1 : i32
    %c0_i32 = arith.constant 0 : i32
    %2 = arith.minsi %1, %c0_i32 : i32
    %c0_i32_0 = arith.constant 0 : i32
    %c0_i32_1 = arith.constant 0 : i32
    %c0_i32_2 = arith.constant 0 : i32
    return %c0_i32_0, %2, %c0_i32_1 : i32, i32, i32
  }
  func.func @transform_1(%arg0: i32, %arg1: i32) -> (i32, i32, i32) {
    %c1_i32 = arith.constant 1 : i32
    %0 = arith.muli %arg0, %c1_i32 : i32
    %1 = arith.addi %0, %arg1 : i32
    %c0_i32 = arith.constant 0 : i32
    %2 = arith.minsi %1, %c0_i32 : i32
    %c0_i32_0 = arith.constant 0 : i32
    %c0_i32_1 = arith.constant 0 : i32
    %c0_i32_2 = arith.constant 0 : i32
    return %c0_i32_0, %2, %c0_i32_1 : i32, i32, i32
  }
  func.func @transform_2(%arg0: i32, %arg1: i32) -> (i32, i32, i32) {
    %c0_i32 = arith.constant 0 : i32
    %c0_i32_0 = arith.constant 0 : i32
    %c0_i32_1 = arith.constant 0 : i32
    return %arg0, %c0_i32, %c0_i32_0 : i32, i32, i32
  }
  func.func @transform_3(%arg0: i32, %arg1: i32) -> (i32, i32, i32) {
    %c0_i32 = arith.constant 0 : i32
    %c0_i32_0 = arith.constant 0 : i32
    %c0_i32_1 = arith.constant 0 : i32
    return %arg0, %c0_i32, %c0_i32_0 : i32, i32, i32
  }
}

</mosaic_0001>

<bundles_post_ra>
// kernel: tpu_custom_call.1
= control target key start
LH: loop header
LB: loop body
LE: loop exit
PB: predicated region body
PF: predicated region fallthrough
CT: control target
= control target key end

     0   :  { %9 = vsyncpa [#allocation3], 0  ;;  %s304_s0 = inlined_call_operand.hbm [shape: f32[2,8,128], index: 0, kind: input, shape index: {}]   ;;  %s305_s1 = inlined_call_operand.hbm [shape: f32[2,8,128], index: 1, kind: input, shape index: {}]   ;;  %s306_s2 = inlined_call_operand.hbm [shape: f32[1,2,128], index: 2, kind: output, shape index: {0}]   ;;  %s307_s3 = inlined_call_operand.hbm [shape: f32[1,2,128], index: 3, kind: output, shape index: {1}]  }
   0x1   :  { %10 = vsyncpa [#allocation6], 0 }
   0x2   :  { %11 = vsyncpa [#allocation4], 0 }
   0x3   :  { %12 = vsyncpa [#allocation9], 0  ;;  %s22_s14 = sshll.u32 %s304_s0, 4  ;;  %s265_s15 = smov [#allocation2]   ;;  %s23_s14 = int_to_ptr.hbm [resolvable:$true] %s22_s14 }
   0x4   :  { %s24_s16 = sshll.u32 %s265_s15, 4  ;;  %s40_s19 = sshll.u32 %s305_s1, 4  ;;  %s25_s16 = int_to_ptr.vmem [resolvable:$true] %s24_s16  ;;  %s41_s19 = int_to_ptr.hbm [resolvable:$true] %s40_s19 }
   0x5   :  { %s266_s20 = smov 128   ;;  %s267_s21 = smov 8  }
   0x6   :  { %30 = dma.hbm_to_vmem [thread:$0]  %s23_s14, 256, %s25_s16, [#allocation3], %s266_s20, %s266_s20, %s267_s21  }
   0x7   :  { %s268_s22 = smov [#allocation5]  }
   0x8   :  { %s42_s23 = sshll.u32 %s268_s22, 4  ;;  %s43_s23 = int_to_ptr.vmem [resolvable:$true] %s42_s23 }
   0x9   :  { %48 = dma.hbm_to_vmem [thread:$0]  %s41_s19, 256, %s43_s23, [#allocation6], %s266_s20, %s266_s20, %s267_s21  }
   0xa   :  { %257 = dma.done.wait [#allocation3], 256  }
   0xb   :  { %258 = vsyncadd [#allocation3], 4294967040 }
   0xc   :  { %259 = dma.done.wait [#allocation6], 256  }
   0xd   :  { %260 = vsyncadd [#allocation6], 4294967040  ;;  %v269_v0 = vmov 0.0   ;;  %v69_v1 = vld [vmem:[#allocation2] sm:$0xff]  ;;  %v70_v2 = vld [vmem:[#allocation2 + $0x8] sm:$0xff]  ;;  %vm90_vm0 = vcmask 1041409  }
   0xe   :  { %67 = vst [vmem:[#allocation7] sm:$0x3] %v269_v0  ;;  %v71_v3 = vld [vmem:[#allocation5] sm:$0xff]  ;;  %v72_v4 = vld [vmem:[#allocation5 + $0x8] sm:$0xff]  ;;  %s270_s0 = smov [#allocation7]   ;;  %s123_s26 = sshll.u32 %s306_s2, 4  ;;  %s124_s26 = int_to_ptr.hbm [resolvable:$true] %s123_s26 }
   0xf   :  { %68 = vst [vmem:[#allocation8] sm:$0x3] %v269_v0  ;;  %v74_v5 = vmul.f32 %v71_v3, %v69_v1  ;;  %v96_v6 = vadd.f32 %v71_v3, %v69_v1  ;;  %v75_v7 = vmul.f32 %v72_v4, %v70_v2  ;;  %v97_v8 = vadd.f32 %v72_v4, %v70_v2  ;;  %s121_s1 = sshll.u32 %s270_s0, 4  ;;  %s271_s27 = smov [#allocation8]   ;;  %s122_s1 = int_to_ptr.vmem [resolvable:$true] %s121_s1 }
  0x10   :  { %s132_s28 = sshll.u32 %s271_s27, 4  ;;  %s134_s4 = sshll.u32 %s307_s3, 4  ;;  %s133_s28 = int_to_ptr.vmem [resolvable:$true] %s132_s28  ;;  %s135_s4 = int_to_ptr.hbm [resolvable:$true] %s134_s4 }
  0x11   :  { %v76_v9 = vrot.slane %v74_v5, 4  ;;  %v98_v10 = vrot.slane %v96_v6, 4  ;;  %v82_v11 = vrot.slane %v75_v7, 4  ;;  %v104_v12 = vrot.slane %v97_v8, 4 }
  0x13   :  { %v77_v13 = vadd.f32 %v76_v9, %v74_v5  ;;  %v99_v14 = vadd.f32 %v98_v10, %v96_v6  ;;  %v83_v15 = vadd.f32 %v82_v11, %v75_v7  ;;  %v105_v16 = vadd.f32 %v104_v12, %v97_v8 }
  0x15   :  { %v78_v17 = vrot.slane %v77_v13, 2  ;;  %v100_v18 = vrot.slane %v99_v14, 2  ;;  %v84_v19 = vrot.slane %v83_v15, 2  ;;  %v106_v20 = vrot.slane %v105_v16, 2  ;;  %v73_v31 = vld [vmem:[#allocation7] sm:$0x3] }
  0x16   :  { %v95_v33 = vld [vmem:[#allocation8] sm:$0x3] }
  0x17   :  { %v79_v21 = vadd.f32 %v78_v17, %v77_v13  ;;  %v101_v22 = vadd.f32 %v100_v18, %v99_v14  ;;  %v85_v23 = vadd.f32 %v84_v19, %v83_v15  ;;  %v107_v24 = vadd.f32 %v106_v20, %v105_v16 }
  0x19   :  { %v80_v25 = vrot.slane %v79_v21, 1  ;;  %v102_v26 = vrot.slane %v101_v22, 1  ;;  %v86_v27 = vrot.slane %v85_v23, 1  ;;  %v108_v28 = vrot.slane %v107_v24, 1 }
  0x1b   :  { %v81_v29 = vadd.f32 %v80_v25, %v79_v21  ;;  %v103_v30 = vadd.f32 %v102_v26, %v101_v22  ;;  %v87_v32 = vadd.f32 %v86_v27, %v85_v23  ;;  %v109_v34 = vadd.f32 %v108_v28, %v107_v24 }
  0x1d   :  { %v91_v35 = vsel %vm90_vm0, %v87_v32, %v81_v29  ;;  %v112_v36 = vsel %vm90_vm0, %v109_v34, %v103_v30 }
  0x1e   :  { %v93_v37 = vadd.f32 %v91_v35, %v73_v31  ;;  %v114_v38 = vadd.f32 %v112_v36, %v95_v33 }
  0x20   :  { %94 = vst [vmem:[#allocation7] sm:$0x3] %v93_v37 }
  0x21   :  { %115 = vst [vmem:[#allocation8] sm:$0x3] %v114_v38  ;;  %126 = dma.vmem_to_hbm [thread:$0]  %s122_s1, 32, %s124_s26, [#allocation4]  }
  0x22   :  { %137 = dma.vmem_to_hbm [thread:$0]  %s133_s28, 32, %s135_s4, [#allocation9]  }
  0x23   :  { %261 = dma.done.wait [#allocation4], 32  }
  0x24   :  { %262 = vsyncadd [#allocation4], 4294967264 }
  0x25   :  { %263 = dma.done.wait [#allocation9], 32  }
  0x26   :  { %264 = vsyncadd [#allocation9], 4294967264 }
  0x27   :  { %146 = vsyncpa [#allocation3], 1 }
  0x28   :  { %147 = vsyncpa [#allocation6], 1 }
  0x29   :  { %148 = vsyncpa [#allocation4], 1 }
  0x2a   :  { %149 = vsyncpa [#allocation9], 1 }

</bundles_post_ra>
